<compile_context>
chip_gen: v5e
topology: v5e:2x2
jax: 0.10.0
libtpu: 0.0.40
codegen_flags: <defaults>
</compile_context>

<pallas_src>
import functools

import jax
import jax.numpy as jnp
from jax.experimental import pallas as pl
from jax.experimental.pallas import tpu as pltpu


def _stat_pool_kernel(x_ref, out_ref, sum_ref, sumsq_ref, *, total_t, d, k, r):
    # x_ref:    (bb, bt, k*d)  lane-folded input tile in VMEM
    # out_ref:  (bb, 2, d)     [:,0,:] = mean, [:,1,:] = std (written on last step)
    # sum_ref/sumsq_ref: (bb, r, k*d) f32 running accumulators in VMEM scratch
    kt = pl.program_id(1)

    @pl.when(kt == 0)
    def _init():
        sum_ref[...] = jnp.zeros_like(sum_ref)
        sumsq_ref[...] = jnp.zeros_like(sumsq_ref)

    x = x_ref[...].astype(jnp.float32)                  # (bb, bt, k*d)
    bb, bt, df = x.shape
    xr = x.reshape(bb, bt // r, r, df)                  # layout-preserving sublane grouping
    sum_ref[...] += jnp.sum(xr, axis=1)                 # full-vreg VALU adds
    sumsq_ref[...] += jnp.sum(xr * xr, axis=1)

    @pl.when(kt == pl.num_programs(1) - 1)
    def _finalize():
        s = sum_ref[...]
        ss = sumsq_ref[...]
        if r > 1:                                       # collapse sublane groups (once, XLU)
            s = jnp.sum(s, axis=1)
            ss = jnp.sum(ss, axis=1)
        else:
            s = s[:, 0, :]
            ss = ss[:, 0, :]
        if k > 1:                                       # collapse lane folds (static slices, once)
            s_tot, ss_tot = s[:, 0:d], ss[:, 0:d]
            for j in range(1, k):
                s_tot = s_tot + s[:, j * d:(j + 1) * d]
                ss_tot = ss_tot + ss[:, j * d:(j + 1) * d]
            s, ss = s_tot, ss_tot

        t = jnp.float32(total_t)
        mean = s / t
        if total_t > 1:
            # Unbiased variance, clamped >= 0 against one-pass cancellation.
            var = jnp.maximum((ss - t * mean * mean) / jnp.float32(total_t - 1), 0.0)
            std = jnp.sqrt(var)
        else:
            std = jnp.full_like(mean, jnp.nan)          # torch.std of 1 sample is NaN

        out_ref[:, 0, :] = mean.astype(out_ref.dtype)
        out_ref[:, 1, :] = std.astype(out_ref.dtype)


def _pick_block_b(b):
    """Divisor of b; prefer a parallel extent >= 2 so both v7x TCs get work."""
    if b < 2:
        return max(b, 1)
    cap = min(32, b // 2)
    for cand in range(cap, 0, -1):
        if b % cand == 0:
            return cand
    return 1


def _pick_block_t(t_f, target, align):
    """Return (block_t, padded_t_f). Prefer an aligned divisor of t_f; otherwise
    pad (zero rows are neutral for sum / sum-of-squares)."""
    if t_f <= target:
        return t_f, t_f                                  # full dim: always a legal block
    lim = max(align, (target // align) * align)
    best = 0
    for cand in range(align, lim + 1, align):
        if t_f % cand == 0:
            best = cand
    if best > 0:
        return best, t_f
    return lim, ((t_f + lim - 1) // lim) * lim


def addition_forward(x: jax.Array) -> jax.Array:
    """Statistical pooling: concat(mean over dim 1, unbiased std over dim 1) on dim 1."""
    B, T, D = x.shape
    dtype = x.dtype
    itemsize = jnp.dtype(dtype).itemsize
    # Dtype-aware sublane alignment: f32 -> 8, bf16 -> 16, int8/fp8 -> 32.
    align = 8 * max(1, 4 // itemsize)

    # Lane-density fold: pack k consecutive rows into the lane dim when D < 128.
    k = (128 // D) if (D < 128 and 128 % D == 0) else 1
    d_f = k * D
    t_f = -(-T // k)                                     # folded seq length (ceil)

    block_b = _pick_block_b(B)

    # ~12 MiB per-step input slab; 2x double-buffered + scratch stays well under
    # the explicit 48 MiB vmem limit (v7x physical VMEM = 64 MiB).
    slab_bytes = 12 << 20
    t_target = max(align, slab_bytes // max(1, block_b * d_f * itemsize))
    block_t, t_f_pad = _pick_block_t(t_f, t_target, align)

    t_pad = t_f_pad * k
    if t_pad != T:
        x = jnp.pad(x, ((0, 0), (0, t_pad - T), (0, 0)))  # zeros: neutral for sum/sumsq
    if k > 1:
        x = x.reshape(B, t_f_pad, d_f)

    # Defer the cross-sublane reduction to finalize when the tile allows it.
    r = 8 if block_t % 8 == 0 else 1

    grid = (B // block_b, t_f_pad // block_t)
    kernel = functools.partial(_stat_pool_kernel, total_t=T, d=D, k=k, r=r)

    out = pl.pallas_call(
        kernel,
        out_shape=jax.ShapeDtypeStruct((B, 2, D), dtype),
        grid_spec=pltpu.PrefetchScalarGridSpec(
            num_scalar_prefetch=0,
            grid=grid,
            in_specs=[pl.BlockSpec((block_b, block_t, d_f), lambda ib, kt: (ib, kt, 0))],
            out_specs=pl.BlockSpec((block_b, 2, D), lambda ib, kt: (ib, 0, 0)),
            scratch_shapes=[
                pltpu.VMEM((block_b, r, d_f), jnp.float32),
                pltpu.VMEM((block_b, r, d_f), jnp.float32),
            ],
        ),
        compiler_params=pltpu.CompilerParams(
            dimension_semantics=("parallel", "arbitrary"),
            vmem_limit_bytes=48 << 20,
        ),
        cost_estimate=pl.CostEstimate(
            flops=3 * B * t_pad * D + 6 * B * D,
            transcendentals=B * D,
            bytes_accessed=B * t_pad * D * itemsize + 2 * B * D * itemsize,
        ),
    )(x)

    # (B, 2, D) -> (B, 2*D): contiguous reshape, no concat copy.
    return out.reshape(B, 2 * D)


if __name__ == "__main__":
    key = jax.random.PRNGKey(0)

    # Main case (module-consistent small shape): batch=2, seq=8, hidden=32.
    B, T, D = 2, 8, 32
    x = jax.random.normal(key, (B, T, D), dtype=jnp.float32)
    out = jax.block_until_ready(addition_forward(x))
    ref = jnp.concatenate([jnp.mean(x, axis=1), jnp.std(x, axis=1, ddof=1)], axis=1)
    assert out.shape == (B, 2 * D)
    assert jnp.allclose(out, ref, atol=1e-4, rtol=1e-4)

    # Awkward-shape sanity check (no lane fold, odd T, odd B).
    key2 = jax.random.PRNGKey(1)
    x2 = jax.random.normal(key2, (3, 37, 20), dtype=jnp.float32)
    out2 = jax.block_until_ready(addition_forward(x2))
    ref2 = jnp.concatenate([jnp.mean(x2, axis=1), jnp.std(x2, axis=1, ddof=1)], axis=1)
    assert out2.shape == (3, 40)
    assert jnp.allclose(out2, ref2, atol=1e-4, rtol=1e-4)

    print("KERNEL_OK")
</pallas_src>

<mosaic_0001>
module attributes {stable_mosaic.version = 11 : i64} {
  func.func @_stat_pool_kernel(%arg0: i32, %arg1: i32, %arg2: memref<1x2x128xf32, #tpu.memory_space<vmem>>, %arg3: memref<1x2x32xf32, #tpu.memory_space<vmem>>, %arg4: memref<1x1x128xf32, #tpu.memory_space<vmem>>, %arg5: memref<1x1x128xf32, #tpu.memory_space<vmem>>) attributes {dimension_semantics = [#tpu.dimension_semantics<parallel>, #tpu.dimension_semantics<arbitrary>], iteration_bounds = array<i64: 2, 1>, scalar_prefetch = 0 : i64, scratch_operands = 2 : i64, tpu.core_type = #tpu.core_type<tc>, window_params = [{transform_indices = @transform_0, window_bounds = array<i64: 1, 2, 128>}, {transform_indices = @transform_1, window_bounds = array<i64: 1, 2, 32>}]} {
    %c0_i32 = arith.constant 0 : i32
    %0 = arith.cmpi eq, %arg1, %c0_i32 : i32
    %1 = arith.extui %0 : i1 to i32
    %c0_i32_0 = arith.constant 0 : i32
    %2 = arith.cmpi ne, %1, %c0_i32_0 : i32
    scf.if %2 {
      %cst_18 = arith.constant 0.000000e+00 : f32
      %17 = vector.broadcast %cst_18 : f32 to vector<1x1x128xf32>
      %c0_19 = arith.constant 0 : index
      %c0_20 = arith.constant 0 : index
      %c0_21 = arith.constant 0 : index
      %18 = vector.load %arg4[%c0_19, %c0_20, %c0_21] : memref<1x1x128xf32, #tpu.memory_space<vmem>>, vector<1x1x128xf32>
      tpu.vector_store %arg4[%c0_19, %c0_20, %c0_21], %17 {strides = array<i32>} : memref<1x1x128xf32, #tpu.memory_space<vmem>>, vector<1x1x128xf32>,
      %cst_22 = arith.constant 0.000000e+00 : f32
      %19 = vector.broadcast %cst_22 : f32 to vector<1x1x128xf32>
      %c0_23 = arith.constant 0 : index
      %c0_24 = arith.constant 0 : index
      %c0_25 = arith.constant 0 : index
      %20 = vector.load %arg5[%c0_23, %c0_24, %c0_25] : memref<1x1x128xf32, #tpu.memory_space<vmem>>, vector<1x1x128xf32>
      tpu.vector_store %arg5[%c0_23, %c0_24, %c0_25], %19 {strides = array<i32>} : memref<1x1x128xf32, #tpu.memory_space<vmem>>, vector<1x1x128xf32>,
    } else {
    }
    %c0 = arith.constant 0 : index
    %c0_1 = arith.constant 0 : index
    %c0_2 = arith.constant 0 : index
    %3 = vector.load %arg2[%c0, %c0_1, %c0_2] : memref<1x2x128xf32, #tpu.memory_space<vmem>>, vector<1x2x128xf32>
    %4 = vector.shape_cast %3 : vector<1x2x128xf32> to vector<1x2x1x128xf32>
    %c0_3 = arith.constant 0 : index
    %c0_4 = arith.constant 0 : index
    %c0_5 = arith.constant 0 : index
    %5 = vector.load %arg4[%c0_3, %c0_4, %c0_5] : memref<1x1x128xf32, #tpu.memory_space<vmem>>, vector<1x1x128xf32>
    %cst = arith.constant dense<0.000000e+00> : vector<1x1x128xf32>
    %6 = vector.multi_reduction <add>, %4, %cst [1] : vector<1x2x1x128xf32> to vector<1x1x128xf32>
    %7 = arith.addf %5, %6 : vector<1x1x128xf32>
    %c0_6 = arith.constant 0 : index
    %c0_7 = arith.constant 0 : index
    %c0_8 = arith.constant 0 : index
    %8 = vector.load %arg4[%c0_6, %c0_7, %c0_8] : memref<1x1x128xf32, #tpu.memory_space<vmem>>, vector<1x1x128xf32>
    tpu.vector_store %arg4[%c0_6, %c0_7, %c0_8], %7 {strides = array<i32>} : memref<1x1x128xf32, #tpu.memory_space<vmem>>, vector<1x1x128xf32>,
    %c0_9 = arith.constant 0 : index
    %c0_10 = arith.constant 0 : index
    %c0_11 = arith.constant 0 : index
    %9 = vector.load %arg5[%c0_9, %c0_10, %c0_11] : memref<1x1x128xf32, #tpu.memory_space<vmem>>, vector<1x1x128xf32>
    %10 = arith.mulf %4, %4 : vector<1x2x1x128xf32>
    %cst_12 = arith.constant dense<0.000000e+00> : vector<1x1x128xf32>
    %11 = vector.multi_reduction <add>, %10, %cst_12 [1] : vector<1x2x1x128xf32> to vector<1x1x128xf32>
    %12 = arith.addf %9, %11 : vector<1x1x128xf32>
    %c0_13 = arith.constant 0 : index
    %c0_14 = arith.constant 0 : index
    %c0_15 = arith.constant 0 : index
    %13 = vector.load %arg5[%c0_13, %c0_14, %c0_15] : memref<1x1x128xf32, #tpu.memory_space<vmem>>, vector<1x1x128xf32>
    tpu.vector_store %arg5[%c0_13, %c0_14, %c0_15], %12 {strides = array<i32>} : memref<1x1x128xf32, #tpu.memory_space<vmem>>, vector<1x1x128xf32>,
    %c0_i32_16 = arith.constant 0 : i32
    %14 = arith.cmpi eq, %arg1, %c0_i32_16 : i32
    %15 = arith.extui %14 : i1 to i32
    %c0_i32_17 = arith.constant 0 : i32
    %16 = arith.cmpi ne, %15, %c0_i32_17 : i32
    scf.if %16 {
      %c0_18 = arith.constant 0 : index
      %c0_19 = arith.constant 0 : index
      %c0_20 = arith.constant 0 : index
      %17 = vector.load %arg4[%c0_18, %c0_19, %c0_20] : memref<1x1x128xf32, #tpu.memory_space<vmem>>, vector<1x1x128xf32>
      %c0_21 = arith.constant 0 : index
      %c0_22 = arith.constant 0 : index
      %c0_23 = arith.constant 0 : index
      %18 = vector.load %arg5[%c0_21, %c0_22, %c0_23] : memref<1x1x128xf32, #tpu.memory_space<vmem>>, vector<1x1x128xf32>
      %19 = vector.shape_cast %17 : vector<1x1x128xf32> to vector<1x128xf32>
      %20 = vector.shape_cast %18 : vector<1x1x128xf32> to vector<1x128xf32>
      %21 = vector.extract_strided_slice %19 {offsets = [0, 0], sizes = [1, 32], strides = [1, 1]} : vector<1x128xf32> to vector<1x32xf32>
      %22 = vector.extract_strided_slice %20 {offsets = [0, 0], sizes = [1, 32], strides = [1, 1]} : vector<1x128xf32> to vector<1x32xf32>
      %23 = vector.extract_strided_slice %19 {offsets = [0, 32], sizes = [1, 32], strides = [1, 1]} : vector<1x128xf32> to vector<1x32xf32>
      %24 = arith.addf %21, %23 : vector<1x32xf32>
      %25 = vector.extract_strided_slice %20 {offsets = [0, 32], sizes = [1, 32], strides = [1, 1]} : vector<1x128xf32> to vector<1x32xf32>
      %26 = arith.addf %22, %25 : vector<1x32xf32>
      %27 = vector.extract_strided_slice %19 {offsets = [0, 64], sizes = [1, 32], strides = [1, 1]} : vector<1x128xf32> to vector<1x32xf32>
      %28 = arith.addf %24, %27 : vector<1x32xf32>
      %29 = vector.extract_strided_slice %20 {offsets = [0, 64], sizes = [1, 32], strides = [1, 1]} : vector<1x128xf32> to vector<1x32xf32>
      %30 = arith.addf %26, %29 : vector<1x32xf32>
      %31 = vector.extract_strided_slice %19 {offsets = [0, 96], sizes = [1, 32], strides = [1, 1]} : vector<1x128xf32> to vector<1x32xf32>
      %32 = arith.addf %28, %31 : vector<1x32xf32>
      %33 = vector.extract_strided_slice %20 {offsets = [0, 96], sizes = [1, 32], strides = [1, 1]} : vector<1x128xf32> to vector<1x32xf32>
      %34 = arith.addf %30, %33 : vector<1x32xf32>
      %cst_24 = arith.constant 8.000000e+00 : f32
      %35 = vector.broadcast %cst_24 : f32 to vector<1x32xf32>
      %36 = arith.divf %32, %35 : vector<1x32xf32>
      %cst_25 = arith.constant 8.000000e+00 : f32
      %37 = vector.broadcast %cst_25 : f32 to vector<1x32xf32>
      %38 = arith.mulf %37, %36 : vector<1x32xf32>
      %39 = arith.mulf %38, %36 : vector<1x32xf32>
      %40 = arith.subf %34, %39 : vector<1x32xf32>
      %cst_26 = arith.constant 7.000000e+00 : f32
      %41 = vector.broadcast %cst_26 : f32 to vector<1x32xf32>
      %42 = arith.divf %40, %41 : vector<1x32xf32>
      %cst_27 = arith.constant 0.000000e+00 : f32
      %43 = vector.broadcast %cst_27 : f32 to vector<1x32xf32>
      %44 = arith.maximumf %42, %43 : vector<1x32xf32>
      %45 = math.sqrt %44 : vector<1x32xf32>
      %c0_28 = arith.constant 0 : index
      %c0_29 = arith.constant 0 : index
      %c0_30 = arith.constant 0 : index
      %46 = vector.load %arg3[%c0_28, %c0_29, %c0_30] : memref<1x2x32xf32, #tpu.memory_space<vmem>>, vector<1x1x32xf32>
      %47 = vector.shape_cast %46 : vector<1x1x32xf32> to vector<1x32xf32>
      %48 = vector.shape_cast %36 : vector<1x32xf32> to vector<1x1x32xf32>
      tpu.vector_store %arg3[%c0_28, %c0_29, %c0_30], %48 {strides = array<i32>} : memref<1x2x32xf32, #tpu.memory_space<vmem>>, vector<1x1x32xf32>,
      %c0_31 = arith.constant 0 : index
      %c1 = arith.constant 1 : index
      %c0_32 = arith.constant 0 : index
      %49 = vector.load %arg3[%c0_31, %c1, %c0_32] : memref<1x2x32xf32, #tpu.memory_space<vmem>>, vector<1x1x32xf32>
      %50 = vector.shape_cast %49 : vector<1x1x32xf32> to vector<1x32xf32>
      %51 = vector.shape_cast %45 : vector<1x32xf32> to vector<1x1x32xf32>
      tpu.vector_store %arg3[%c0_31, %c1, %c0_32], %51 {strides = array<i32>} : memref<1x2x32xf32, #tpu.memory_space<vmem>>, vector<1x1x32xf32>,
    } else {
    }
    return
  }
  func.func @transform_0(%arg0: i32, %arg1: i32) -> (i32, i32, i32) {
    %c0_i32 = arith.constant 0 : i32
    %c0_i32_0 = arith.constant 0 : i32
    return %arg0, %arg1, %c0_i32 : i32, i32, i32
  }
  func.func @transform_1(%arg0: i32, %arg1: i32) -> (i32, i32, i32) {
    %c0_i32 = arith.constant 0 : i32
    %c0_i32_0 = arith.constant 0 : i32
    %c0_i32_1 = arith.constant 0 : i32
    return %arg0, %c0_i32, %c0_i32_0 : i32, i32, i32
  }
}

</mosaic_0001>

<bundles_post_ra>
// kernel: tpu_custom_call.1
= control target key start
LH: loop header
LB: loop body
LE: loop exit
PB: predicated region body
PF: predicated region fallthrough
CT: control target
= control target key end

     0   :  { %6 = vsyncpa [#allocation5], 0  ;;  %s678_s0 = inlined_call_operand.hbm [shape: f32[2,2,128], index: 0, kind: input, shape index: {}]   ;;  %s679_s1 = inlined_call_operand.hbm [shape: f32[2,2,32], index: 1, kind: output, shape index: {}]  }
   0x1   :  { %8 = vsyncpa [#allocation5 + $0x1], 0 }
   0x2   :  { %9 = vsyncpa [#allocation6], 0 }
   0x3   :  { %11 = vsyncpa [#allocation6 + $0x1], 0  ;;  %s552_s6 = smov 0   ;;  %s554_s7 = smov 0  }
   0x4   :  { %s556_s8 = smov 0   ;;  %s558_s9 = smov 0  }
   0x5   :  { %s560_s10 = smov 0   ;;  %s562_s11 = smov 0  }
   0x6 LB: > { %s335_s12 = sadd.s32 4294967295, %s534_s11   ;;  %s336_s13 = sadd.s32 4294967294, %s534_s11   ;;  %s534_s11 = sphi %s562_s11, %s17_s11   ;;  %s530_s10 = sphi %s560_s10, %s688_s10   ;;  %s526_s9 = sphi %s558_s9, %s687_s9   ;;  %s522_s8 = sphi %s556_s8, %s686_s8   ;;  %s518_s7 = sphi %s554_s7, %s685_s7   ;;  %s514_s6 = sphi %s552_s6, %s684_s6  }
   0x7   : > { %s29_s14 = sadd.s32 1, %s530_s10  ;;  %s38_s15 = sadd.s32 1, %s522_s8 }
   0x8   : > { %p31_p0 = scmp.ge.s32.totalorder %s29_s14, 2  ;;  %p45_p1 = scmp.ne.s32.totalorder %s522_s8, %s518_s7 }
   0x9   : > { %p46_p2 = scmp.eq.s32.totalorder %s534_s11, 0  ;;  %p51_p3 = scmp.ne.s32.totalorder %s518_s7, %s514_s6 }
   0xa   : > { %s690_s14 = smov (%p31_p0, %s29_s14), 0  ;;  %p52_p5 = scmp.eq.s32.totalorder %s335_s12, 0 }
   0xb   : > { %p593_p4 = por %p46_p2, %p45_p1  ;;  %s33_s17 = ssub.s32 %s530_s10, %s690_s14 }
   0xc   : > { %p75_p6 = scmp.eq.s32.totalorder %s335_s12, 1  ;;  %p36_p7 = scmp.eq.s32.totalorder %s33_s17, 0 }
   0xd   : > { %p599_p8 = por %p52_p5, %p51_p3  ;;  %p81_p10 = scmp.eq.s32.totalorder %s336_s13, 1 }
   0xe   : > { %p603_p9 = por %p75_p6, %p45_p1  ;;  %p338_p12 = scmp.ge.s32.totalorder %s534_s11, 2 }
   0xf   : > { %s608_s20 = scalar_select %p36_p7, %s522_s8, %s38_s15  }
  0x10   : > { %p610_p11 = por %p81_p10, %p51_p3  ;;  %p360_p13 = scmp.lt.s32.totalorder %s534_s11, 2 }
  0x11   : > { %s101_s22 = sand.u32 1, %s522_s8   ;;  %s340_s24 = sshll.u32 %s530_s10, 1 }
  0x12   : > { %s339_s23 = sshll.u32 %s101_s22, 1  ;;  %s110_s27 = scalar_lea.hbm %s678_s0, %s340_s24 }
  0x13   : > { %s105_s28 = scalar_lea.vmem [#allocation4], %s339_s23  ;;  %s112_s30 = sshll.u32 %s110_s27, 4  ;;  %s113_s30 = int_to_ptr.hbm [resolvable:$true] %s112_s30 }
  0x14   : > { %s114_s29 = sshll.u32 %s105_s28, 4  ;;  %p353_p0 = pnand %p360_p13, %p593_p4  ;;  %s115_s29 = int_to_ptr.vmem [resolvable:$true] %s114_s29 }
  0x15   : > { %p341_p1 = scmp.ge.s32.totalorder %s534_s11, 1  ;;  %p119_p2 = scmp.lt.s32.totalorder %s534_s11, 3 }
  0x16   : > { %s102_s2 = scalar_lea.sflag [#allocation5], %s101_s22 }
  0x17   : > { %355 = dma.hbm_to_vmem [thread:$0]  (!%p353_p0), %s113_s30, 32, %s115_s29, %s102_s2  }
  0x18   : > { %p120_p3 = pnand %p341_p1, %p119_p2 }
  0x19   : > { %s626_s3 = sand.u32 (!%p120_p3), 1, %s518_s7  }
  0x1a   : > { %123 = sbr.rel (%p120_p3) target bundleno = 214 (0xd6), region = 24  ;;  %s342_s4 = sshll.u32 (!%p120_p3), %s626_s3, 1 }
  0x1b   : > { %s126_s5 = scalar_lea.sflag (!%p120_p3), [#allocation5], %s626_s3  ;;  %s129_s12 = scalar_lea.vmem (!%p120_p3), [#allocation4], %s342_s4 }
  0x1f   : > { %505 = dma.done.wait (%p599_p8), %s126_s5, 32  }
  0x20   : > { %507 = vsyncadd (%p599_p8), %s126_s5, 4294967264  ;;  %v536_v0 = vmov 0.0   ;;  %vm160_vm0 = vcmask 1040384   ;;  %v155_v1 = vld [vmem:[%s129_s12] sm:$0x3]  ;;  %s537_s13 = smov 32  }
  0x21   : > { %153 = vst [vmem:[#allocation2] sm:$0x1] %v536_v0  ;;  %v157_v2 = vrot.slane %v155_v1, 1  ;;  %v161_v3 = vsel %vm160_vm0, %v155_v1, 0.0  ;;  %v167_v4 = vmul.f32 %v155_v1, %v155_v1  ;;  %s538_s15 = smov 96   ;;  %s539_s16 = smov 64  }
  0x22   : > { %154 = vst [vmem:[#allocation3] sm:$0x1] %v536_v0  ;;  %v540_v17 = vmov 8.0   ;;  %v541_v19 = vmov 7.0   ;;  %vm237_vm2 = vcmask 253952   ;;  %s148_s17 = scalar_lea.vmem [#allocation7], %s342_s4 }
  0x23   : > { %v162_v6 = vsel %vm160_vm0, %v157_v2, 0.0  ;;  %v168_v7 = vmul.f32 %v157_v2, %v157_v2  ;;  %v169_v8 = vsel %vm160_vm0, %v167_v4, 0.0  ;;  %416 = vrcp.f32 %v540_v17  ;;  %s345_s18 = sshll.u32 %s526_s9, 1  ;;  %s253_s25 = sshll.u32 %s148_s17, 4  ;;  %s254_s25 = int_to_ptr.vmem [resolvable:$true] %s253_s25 }
  0x24   : > { %v163_v9 = vadd.f32 %v162_v6, %v161_v3  ;;  %418 = vrcp.f32 %v541_v19  ;;  %s251_s24 = scalar_lea.hbm %s679_s1, %s345_s18  ;;  %s241_s9 = scalar_lea.sflag [#allocation6], %s626_s3 }
  0x25   : > { %v170_v11 = vsel %vm160_vm0, %v168_v7, 0.0  ;;  %s255_s26 = sshll.u32 %s251_s24, 4  ;;  %s472_s2 = scalar_lea.hbm %s679_s1, 4  ;;  %s256_s26 = int_to_ptr.hbm [resolvable:$true] %s255_s26 }
  0x26   : > { %v171_v13 = vadd.f32 %v170_v11, %v169_v8  ;;  %s466_s27 = sshra.s32 %s256_s26, 4  ;;  %s467_s27 = int_to_ptr.hbm [resolvable:$true] %s466_s27 }
  0x27   : > { %s468_s28 = scalar_lea.hbm %s467_s27, 2  ;;  %p473_p7 = scmp.lt.s32.totalorder %s467_s27, %s679_s1 }
  0x28   : > { %v159_v5 = vld [vmem:[#allocation2] sm:$0x1]  ;;  %p469_p4 = scmp.ne.s32.totalorder %s467_s27, %s468_s28  ;;  %p474_p8 = scmp.lt.s32.totalorder %s472_s2, %s468_s28 }
  0x29   : > { %v166_v10 = vld [vmem:[#allocation3] sm:$0x1]  ;;  %v164_v12 = vadd.f32 %v163_v9, %v159_v5  ;;  %v417_v18 = vpop.eup %416 }
  0x2a   : > { %v172_v14 = vadd.f32 %v171_v13, %v166_v10  ;;  %v206_v20 = vmul.f32 8.0, %v417_v18  ;;  %v419_v22 = vpop.eup %418  ;;  %vm210_vm1 = vweird.f32 %v417_v18  ;;  %p470_p5 = pnand %p469_p4, %p603_p9  ;;  %p475_p10 = por %p474_p8, %p473_p7 }
  0x2b   : > { %165 = vst [vmem:[#allocation2] sm:$0x1] %v164_v12  ;;  %v217_v26 = vmul.f32 7.0, %v419_v22  ;;  %vm221_vm3 = vweird.f32 %v419_v22 }
  0x2c   : > { %173 = vst [vmem:[#allocation3] sm:$0x1] %v172_v14  ;;  %v207_v21 = vsub.f32 1.0, %v206_v20  ;;  %p471_p6 = pneg %p470_p5 }
  0x2d   : > { %v218_v29 = vsub.f32 1.0, %v217_v26 }
  0x2e   : > { %v208_v25 = vmul.f32 %v417_v18, %v207_v21  ;;  %p476_p13 = pnand %p475_p10, %p471_p6 }
  0x2f   : > { %v219_v36 = vmul.f32 %v419_v22, %v218_v29 }
  0x30   : > { %v209_v28 = vadd.f32 %v417_v18, %v208_v25 }
  0x31   : > { %v220_v40 = vadd.f32 %v419_v22, %v219_v36 }
  0x32   : > { %v177_v15 = vld [vmem:[#allocation2] sm:$0x1]  ;;  %v211_v35 = vsel %vm210_vm1, %v417_v18, %v209_v28 }
  0x33   : > { %197 = vrot.lane.b32.xlu1 %v177_v15, %s537_s13  ;;  %180 = vrot.lane.b32.xlu0 %v177_v15, %s538_s15  ;;  %v178_v16 = vld [vmem:[#allocation3] sm:$0x1]  ;;  %v222_v45 = vsel %vm221_vm3, %v419_v22, %v220_v40 }
  0x34   : > { %193 = vrot.lane.b32.xlu2 %v178_v16, %s539_s16 }
  0x3b   : > { %185 = vrot.lane.b32.xlu1 %v178_v16, %s538_s15  ;;  %189 = vrot.lane.b32.xlu0 %v177_v15, %s539_s16 }
  0x3c   : > { %201 = vrot.lane.b32.xlu2 %v178_v16, %s537_s13 }
  0x8e   : > { %v194_v27 = vpop.permute.xlu2 %193 }
  0x96   : > { %v202_v41 = vpop.permute.xlu2 %201 }
  0xa5   : > { %v198_v23 = vpop.permute.xlu1 %197  ;;  %v181_v24 = vpop.permute.xlu0 %180 }
  0xa6   : > { %v183_v30 = vadd.f32 %v181_v24, %v177_v15 }
  0xad   : > { %v186_v31 = vpop.permute.xlu1 %185  ;;  %v190_v32 = vpop.permute.xlu0 %189 }
  0xae   : > { %v188_v33 = vadd.f32 %v186_v31, %v178_v16  ;;  %v192_v34 = vadd.f32 %v190_v32, %v183_v30 }
  0xb0   : > { %v200_v37 = vadd.f32 %v198_v23, %v192_v34  ;;  %v196_v39 = vadd.f32 %v194_v27, %v188_v33 }
  0xb2   : > { %v212_v38 = vmul.f32 %v211_v35, %v200_v37  ;;  %v204_v43 = vadd.f32 %v202_v41, %v196_v39 }
  0xb4   : > { %v213_v42 = vmul.f32 8.0, %v212_v38  ;;  %238 = vst.msk [vmem:[%s148_s17] sm:$0x1] %vm237_vm2, %v212_v38 }
  0xb6   : > { %v214_v44 = vmul.f32 %v213_v42, %v212_v38 }
  0xb8   : > { %v215_v46 = vsub.f32 %v204_v43, %v214_v44 }
  0xba   : > { %v223_v47 = vmul.f32 %v222_v45, %v215_v46 }
  0xbc   : > { %v224_v48 = vmax.f32 %v223_v47, 0.0 }
  0xbe   : > { %420 = vrsqrt.f32 %v224_v48  ;;  %vm232_vm4 = vcmp.eq.f32.partialorder %v224_v48, inf  ;;  %v235_v56 = vand.u32 2147483648, %v224_v48  ;;  %vm234_vm5 = vcmp.eq.f32.partialorder %v224_v48, 0.0 }
  0xc4   : > { %v421_v49 = vpop.eup %420 }
  0xc5   : > { %v226_v50 = vmul.f32 %v421_v49, %v224_v48 }
  0xc7   : > { %v227_v51 = vmul.f32 %v421_v49, %v226_v50 }
  0xc9   : > { %v228_v52 = vmul.f32 0.5, %v227_v51 }
  0xcb   : > { %v229_v53 = vsub.f32 1.5, %v228_v52 }
  0xcd   : > { %v230_v54 = vmul.f32 %v421_v49, %v229_v53 }
  0xcf   : > { %v231_v55 = vmul.f32 %v230_v54, %v224_v48 }
  0xd1   : > { %v233_v57 = vsel %vm232_vm4, %v224_v48, %v231_v55 }
  0xd2   : > { %v236_v58 = vsel %vm234_vm5, %v235_v56, %v233_v57 }
  0xd3   : > { %239 = vst.msk [vmem:[%s148_s17 + $0x1] sm:$0x1] %vm237_vm2, %v236_v58 }
  0xd4   : > { %479 = shalt.err (!%p476_p13)
}
  0xd5   : > { %350 = dma.vmem_to_hbm [thread:$0]  (%p603_p9), %s254_s25, 32, %s256_s26, %s241_s9  }
  0xd6 PF: > { %s267_s3 = sand.u32 1, %s514_s6   ;;  %p357_p0 = pnand %p338_p12, %p610_p11 }
  0xd7   : > { %s268_s12 = scalar_lea.sflag [#allocation6], %s267_s3 }
  0xd8   : > { %p358_p1 = pneg %p357_p0 }
  0xda   : > { %509 = dma.done.wait (%p358_p1), %s268_s12, 32  }
  0xdb   : > { %511 = vsyncadd (%p358_p1), %s268_s12, 4294967264  ;;  %s17_s11 = sadd.s32 1, %s534_s11   ;;  %s684_s6 = smov %s518_s7 }
  0xdc   : > { %p14_p2 = scmp.ge.s32.totalorder %s17_s11, 4   ;;  %s685_s7 = smov %s522_s8 }
  0xdd   : > { %s686_s8 = smov %s608_s20  ;;  %s687_s9 = smov %s530_s10 }
  0xde   : > { %s688_s10 = smov %s690_s14  ;;  %16 = sbr.rel (!%p14_p2) target bundleno = 6 (0x6), region = 77 }
  0xe3   :  { %274 = vsyncpa [#allocation5], 1 }
  0xe4   :  { %276 = vsyncpa [#allocation5 + $0x1], 1 }
  0xe5   :  { %277 = vsyncpa [#allocation6], 1 }
  0xe6   :  { %279 = vsyncpa [#allocation6 + $0x1], 1 }

</bundles_post_ra>
